<compile_context>
chip_gen: v7x
topology: tpu7x:2x2x1
jax: 0.10.0
libtpu: 0.0.40
codegen_flags: <defaults>
</compile_context>

<pallas_src>
import jax
import jax.numpy as jnp
from jax import lax
from jax.experimental import pallas as pl
from jax.experimental.pallas import tpu as pltpu

EPS = 1e-5
NEG_SLOPE = 0.2
LANE = 128  # output-channel tile (lane-dense)


def _make_kernel(n, ho, wo, cin):
    m = n * ho * wo

    def kernel(ph_ref, w_ref, g_ref, b_ref, o_ref, acc_ref):
        # ph_ref : (N, Ho+1, Wo+1, Cin) bf16   -- one parity phase of the padded input
        # w_ref  : (4, Cin, LANE)       bf16   -- the 4 weight taps of this phase
        # g_ref/b_ref : (1, LANE)       f32    -- BN gamma / beta (padded)
        # o_ref  : (M, LANE)            f32
        # acc_ref: (M, LANE)            f32    -- conv accumulator (persists over phases)
        p = pl.program_id(1)

        @pl.when(p == 0)
        def _init():
            acc_ref[...] = jnp.zeros_like(acc_ref)

        acc = acc_ref[...]
        # Within this parity phase, the 4 conv taps are unit-stride windows at static
        # offsets (a, b) in {0,1}^2 of the (Ho+1, Wo+1) phase grid.
        for j in range(4):
            a, b = j // 2, j % 2
            tap = ph_ref[:, a:a + ho, b:b + wo, :]                 # (N, Ho, Wo, Cin) bf16
            # f32 for the (sublane-tile aligned) leading-dim collapse, bf16 into the MXU.
            tap2d = tap.astype(jnp.float32).reshape(m, cin).astype(jnp.bfloat16)
            acc = acc + jnp.dot(tap2d, w_ref[j],
                                preferred_element_type=jnp.float32)
        acc_ref[...] = acc

        @pl.when(p == pl.num_programs(1) - 1)
        def _finalize():
            y = acc_ref[...]                                       # (M, LANE) f32
            inv_m = jnp.float32(1.0 / m)
            # One-pass batch stats (biased variance, BatchNorm2d train mode), all f32.
            mean = jnp.sum(y, axis=0, keepdims=True) * inv_m
            ex2 = jnp.sum(y * y, axis=0, keepdims=True) * inv_m
            var = jnp.maximum(ex2 - mean * mean, 0.0)
            # Fold BN affine into per-channel scale/shift.
            scale = g_ref[...] * lax.rsqrt(var + EPS)
            shift = b_ref[...] - mean * scale
            yn = y * scale + shift
            # LeakyReLU(0.2): max(y, 0.2*y)
            o_ref[...] = jnp.maximum(yn, NEG_SLOPE * yn)

    return kernel


@jax.jit
def downsample_block(x, weight, gamma, beta):
    """x: (N, Cin, H, W) f32 NCHW; weight: (Cout, Cin, 4, 4); gamma, beta: (Cout,)."""
    n, cin, h, w = x.shape
    cout = weight.shape[0]
    ho, wo = h // 2, w // 2
    m = n * ho * wo
    cout_pad = ((cout + LANE - 1) // LANE) * LANE
    n_co = cout_pad // LANE

    # ---- NCHW -> NHWC once (model boundary), zero-pad, 1x phase decomposition. ----
    x_nhwc = jnp.transpose(x, (0, 2, 3, 1)).astype(jnp.bfloat16)
    xp = jnp.pad(x_nhwc, ((0, 0), (1, 1), (1, 1), (0, 0)))        # (N, H+2, W+2, Cin)
    # phase (pi, pj) -> rows/cols of that parity; stacked along batch: (4*N, Ho+1, Wo+1, Cin)
    phases = jnp.concatenate(
        [xp[:, pi::2, pj::2, :] for pi in (0, 1) for pj in (0, 1)], axis=0)

    # ---- weight taps grouped by phase: row = phase*4 + (a*2+b), tap = (2a+pi, 2b+pj). --
    w_hwio = jnp.transpose(weight, (2, 3, 1, 0)).astype(jnp.float32)   # (4, 4, Cin, Cout)
    taps = []
    for pi in (0, 1):
        for pj in (0, 1):
            for a in (0, 1):
                for b in (0, 1):
                    taps.append(w_hwio[2 * a + pi, 2 * b + pj])        # (Cin, Cout)
    w_taps = jnp.stack(taps, axis=0)                                   # (16, Cin, Cout)
    w_taps = jnp.pad(w_taps, ((0, 0), (0, 0), (0, cout_pad - cout))).astype(jnp.bfloat16)

    gamma_p = jnp.pad(gamma.astype(jnp.float32), (0, cout_pad - cout)).reshape(1, cout_pad)
    beta_p = jnp.pad(beta.astype(jnp.float32), (0, cout_pad - cout)).reshape(1, cout_pad)

    kernel = _make_kernel(n, ho, wo, cin)

    out_flat = pl.pallas_call(
        kernel,
        out_shape=jax.ShapeDtypeStruct((m, cout_pad), jnp.float32),
        grid=(n_co, 4),
        in_specs=[
            pl.BlockSpec((n, ho + 1, wo + 1, cin), lambda co, p: (p, 0, 0, 0)),
            pl.BlockSpec((4, cin, LANE), lambda co, p: (p, 0, co)),
            pl.BlockSpec((1, LANE), lambda co, p: (0, co)),
            pl.BlockSpec((1, LANE), lambda co, p: (0, co)),
        ],
        out_specs=pl.BlockSpec((m, LANE), lambda co, p: (0, co)),
        scratch_shapes=[pltpu.VMEM((m, LANE), jnp.float32)],
        compiler_params=pltpu.CompilerParams(
            dimension_semantics=("parallel", "arbitrary"),
            vmem_limit_bytes=32 * 1024 * 1024),
        cost_estimate=pl.CostEstimate(
            flops=2 * m * (16 * cin) * cout_pad,
            transcendentals=cout_pad,
            bytes_accessed=(n_co * 4 * n * (ho + 1) * (wo + 1) * cin * 2
                            + 16 * cin * cout_pad * 2
                            + m * cout_pad * 4)),
    )(phases, w_taps, gamma_p, beta_p)

    # (M, Cout_pad), rows in (n, ho, wo) order -> NCHW only at the model boundary.
    out = out_flat[:, :cout].reshape(n, ho, wo, cout)
    return jnp.transpose(out, (0, 3, 1, 2))


def _reference(x, weight, gamma, beta):
    y = lax.conv_general_dilated(
        x, weight, window_strides=(2, 2), padding=((1, 1), (1, 1)),
        dimension_numbers=("NCHW", "OIHW", "NCHW"))
    mean = jnp.mean(y, axis=(0, 2, 3), keepdims=True)
    var = jnp.mean((y - mean) ** 2, axis=(0, 2, 3), keepdims=True)
    yn = (y - mean) * lax.rsqrt(var + EPS)
    yn = yn * gamma.reshape(1, -1, 1, 1) + beta.reshape(1, -1, 1, 1)
    return jnp.where(yn >= 0, yn, NEG_SLOPE * yn)


if __name__ == "__main__":
    key = jax.random.PRNGKey(0)
    k_x, k_w = jax.random.split(key)

    N, Cin, H, W = 2, 4, 16, 16
    Cout = Cin * 2  # out_channel defaults to 2 * in_channel

    x = jax.random.normal(k_x, (N, Cin, H, W), dtype=jnp.float32)
    # Deterministic conv weight init (uniform +/- 1/sqrt(fan_in), like PyTorch default)
    bound = 1.0 / jnp.sqrt(jnp.float32(Cin * 4 * 4))
    weight = jax.random.uniform(k_w, (Cout, Cin, 4, 4), jnp.float32, -bound, bound)
    # BatchNorm affine params at PyTorch defaults
    gamma = jnp.ones((Cout,), jnp.float32)
    beta = jnp.zeros((Cout,), jnp.float32)

    out = downsample_block(x, weight, gamma, beta)
    out = jax.block_until_ready(out)

    ref = _reference(x, weight, gamma, beta)
    assert out.shape == (N, Cout, H // 2, W // 2)
    # bf16 MXU operands -> relaxed tolerance vs the f32 reference.
    assert jnp.allclose(out, ref, atol=3e-2, rtol=3e-2), float(
        jnp.max(jnp.abs(out - ref)))

    print("KERNEL_OK")
</pallas_src>

<mosaic_0001>
module attributes {stable_mosaic.version = 11 : i64} {
  func.func @kernel(%arg0: i32, %arg1: i32, %arg2: memref<2x9x9x4xbf16, #tpu.memory_space<vmem>>, %arg3: memref<4x4x128xbf16, #tpu.memory_space<vmem>>, %arg4: memref<1x128xf32, #tpu.memory_space<vmem>>, %arg5: memref<1x128xf32, #tpu.memory_space<vmem>>, %arg6: memref<128x128xf32, #tpu.memory_space<vmem>>, %arg7: memref<128x128xf32, #tpu.memory_space<vmem>>) attributes {dimension_semantics = [#tpu.dimension_semantics<parallel>, #tpu.dimension_semantics<arbitrary>], iteration_bounds = array<i64: 1, 4>, scalar_prefetch = 0 : i64, scratch_operands = 1 : i64, tpu.core_type = #tpu.core_type<tc>, window_params = [{transform_indices = @transform_0, window_bounds = array<i64: 2, 9, 9, 4>}, {transform_indices = @transform_1, window_bounds = array<i64: 4, 4, 128>}, {transform_indices = @transform_2, window_bounds = array<i64: 1, 128>}, {transform_indices = @transform_3, window_bounds = array<i64: 1, 128>}, {transform_indices = @transform_4, window_bounds = array<i64: 128, 128>}]} {
    %c0_i32 = arith.constant 0 : i32
    %0 = arith.cmpi eq, %arg1, %c0_i32 : i32
    %1 = arith.extui %0 : i1 to i32
    %c0_i32_0 = arith.constant 0 : i32
    %2 = arith.cmpi ne, %1, %c0_i32_0 : i32
    scf.if %2 {
      %cst_33 = arith.constant 0.000000e+00 : f32
      %40 = vector.broadcast %cst_33 : f32 to vector<128x128xf32>
      %c0_34 = arith.constant 0 : index
      %c0_35 = arith.constant 0 : index
      %41 = vector.load %arg7[%c0_34, %c0_35] : memref<128x128xf32, #tpu.memory_space<vmem>>, vector<128x128xf32>
      tpu.vector_store %arg7[%c0_34, %c0_35], %40 {strides = array<i32>} : memref<128x128xf32, #tpu.memory_space<vmem>>, vector<128x128xf32>,
    } else {
    }
    %c0 = arith.constant 0 : index
    %c0_1 = arith.constant 0 : index
    %3 = vector.load %arg7[%c0, %c0_1] : memref<128x128xf32, #tpu.memory_space<vmem>>, vector<128x128xf32>
    %c0_2 = arith.constant 0 : index
    %c0_3 = arith.constant 0 : index
    %c0_4 = arith.constant 0 : index
    %c0_5 = arith.constant 0 : index
    %4 = vector.load %arg2[%c0_2, %c0_3, %c0_4, %c0_5] : memref<2x9x9x4xbf16, #tpu.memory_space<vmem>>, vector<2x8x8x4xbf16>
    %5 = arith.extf %4 : vector<2x8x8x4xbf16> to vector<2x8x8x4xf32>
    %6 = vector.shape_cast %5 : vector<2x8x8x4xf32> to vector<128x4xf32>
    %7 = arith.truncf %6 : vector<128x4xf32> to vector<128x4xbf16>
    %c0_6 = arith.constant 0 : index
    %c0_7 = arith.constant 0 : index
    %c0_8 = arith.constant 0 : index
    %8 = vector.load %arg3[%c0_6, %c0_7, %c0_8] : memref<4x4x128xbf16, #tpu.memory_space<vmem>>, vector<1x4x128xbf16>
    %9 = vector.shape_cast %8 : vector<1x4x128xbf16> to vector<4x128xbf16>
    %cst = arith.constant dense<0.000000e+00> : vector<128x128xf32>
    %10 = tpu.matmul %7, %9, %cst {dimension_numbers = #tpu.dot_dimension_numbers<[1], [0], [0], [1], [0, 0, 1, 1], [], []>} : vector<128x4xbf16>, vector<4x128xbf16>, vector<128x128xf32> -> vector<128x128xf32>
    %11 = arith.addf %3, %10 : vector<128x128xf32>
    %c0_9 = arith.constant 0 : index
    %c0_10 = arith.constant 0 : index
    %c1 = arith.constant 1 : index
    %c0_11 = arith.constant 0 : index
    %12 = vector.load %arg2[%c0_9, %c0_10, %c1, %c0_11] : memref<2x9x9x4xbf16, #tpu.memory_space<vmem>>, vector<2x8x8x4xbf16>
    %13 = arith.extf %12 : vector<2x8x8x4xbf16> to vector<2x8x8x4xf32>
    %14 = vector.shape_cast %13 : vector<2x8x8x4xf32> to vector<128x4xf32>
    %15 = arith.truncf %14 : vector<128x4xf32> to vector<128x4xbf16>
    %c1_12 = arith.constant 1 : index
    %c0_13 = arith.constant 0 : index
    %c0_14 = arith.constant 0 : index
    %16 = vector.load %arg3[%c1_12, %c0_13, %c0_14] : memref<4x4x128xbf16, #tpu.memory_space<vmem>>, vector<1x4x128xbf16>
    %17 = vector.shape_cast %16 : vector<1x4x128xbf16> to vector<4x128xbf16>
    %cst_15 = arith.constant dense<0.000000e+00> : vector<128x128xf32>
    %18 = tpu.matmul %15, %17, %cst_15 {dimension_numbers = #tpu.dot_dimension_numbers<[1], [0], [0], [1], [0, 0, 1, 1], [], []>} : vector<128x4xbf16>, vector<4x128xbf16>, vector<128x128xf32> -> vector<128x128xf32>
    %19 = arith.addf %11, %18 : vector<128x128xf32>
    %c0_16 = arith.constant 0 : index
    %c1_17 = arith.constant 1 : index
    %c0_18 = arith.constant 0 : index
    %c0_19 = arith.constant 0 : index
    %20 = vector.load %arg2[%c0_16, %c1_17, %c0_18, %c0_19] : memref<2x9x9x4xbf16, #tpu.memory_space<vmem>>, vector<2x8x8x4xbf16>
    %21 = arith.extf %20 : vector<2x8x8x4xbf16> to vector<2x8x8x4xf32>
    %22 = vector.shape_cast %21 : vector<2x8x8x4xf32> to vector<128x4xf32>
    %23 = arith.truncf %22 : vector<128x4xf32> to vector<128x4xbf16>
    %c2 = arith.constant 2 : index
    %c0_20 = arith.constant 0 : index
    %c0_21 = arith.constant 0 : index
    %24 = vector.load %arg3[%c2, %c0_20, %c0_21] : memref<4x4x128xbf16, #tpu.memory_space<vmem>>, vector<1x4x128xbf16>
    %25 = vector.shape_cast %24 : vector<1x4x128xbf16> to vector<4x128xbf16>
    %cst_22 = arith.constant dense<0.000000e+00> : vector<128x128xf32>
    %26 = tpu.matmul %23, %25, %cst_22 {dimension_numbers = #tpu.dot_dimension_numbers<[1], [0], [0], [1], [0, 0, 1, 1], [], []>} : vector<128x4xbf16>, vector<4x128xbf16>, vector<128x128xf32> -> vector<128x128xf32>
    %27 = arith.addf %19, %26 : vector<128x128xf32>
    %c0_23 = arith.constant 0 : index
    %c1_24 = arith.constant 1 : index
    %c1_25 = arith.constant 1 : index
    %c0_26 = arith.constant 0 : index
    %28 = vector.load %arg2[%c0_23, %c1_24, %c1_25, %c0_26] : memref<2x9x9x4xbf16, #tpu.memory_space<vmem>>, vector<2x8x8x4xbf16>
    %29 = arith.extf %28 : vector<2x8x8x4xbf16> to vector<2x8x8x4xf32>
    %30 = vector.shape_cast %29 : vector<2x8x8x4xf32> to vector<128x4xf32>
    %31 = arith.truncf %30 : vector<128x4xf32> to vector<128x4xbf16>
    %c3 = arith.constant 3 : index
    %c0_27 = arith.constant 0 : index
    %c0_28 = arith.constant 0 : index
    %32 = vector.load %arg3[%c3, %c0_27, %c0_28] : memref<4x4x128xbf16, #tpu.memory_space<vmem>>, vector<1x4x128xbf16>
    %33 = vector.shape_cast %32 : vector<1x4x128xbf16> to vector<4x128xbf16>
    %cst_29 = arith.constant dense<0.000000e+00> : vector<128x128xf32>
    %34 = tpu.matmul %31, %33, %cst_29 {dimension_numbers = #tpu.dot_dimension_numbers<[1], [0], [0], [1], [0, 0, 1, 1], [], []>} : vector<128x4xbf16>, vector<4x128xbf16>, vector<128x128xf32> -> vector<128x128xf32>
    %35 = arith.addf %27, %34 : vector<128x128xf32>
    %c0_30 = arith.constant 0 : index
    %c0_31 = arith.constant 0 : index
    %36 = vector.load %arg7[%c0_30, %c0_31] : memref<128x128xf32, #tpu.memory_space<vmem>>, vector<128x128xf32>
    tpu.vector_store %arg7[%c0_30, %c0_31], %35 {strides = array<i32>} : memref<128x128xf32, #tpu.memory_space<vmem>>, vector<128x128xf32>,
    %c3_i32 = arith.constant 3 : i32
    %37 = arith.cmpi eq, %arg1, %c3_i32 : i32
    %38 = arith.extui %37 : i1 to i32
    %c0_i32_32 = arith.constant 0 : i32
    %39 = arith.cmpi ne, %38, %c0_i32_32 : i32
    scf.if %39 {
      %c0_33 = arith.constant 0 : index
      %c0_34 = arith.constant 0 : index
      %40 = vector.load %arg7[%c0_33, %c0_34] : memref<128x128xf32, #tpu.memory_space<vmem>>, vector<128x128xf32>
      %cst_35 = arith.constant dense<0.000000e+00> : vector<128xf32>
      %41 = vector.multi_reduction <add>, %40, %cst_35 [0] : vector<128x128xf32> to vector<128xf32>
      %42 = vector.shape_cast %41 : vector<128xf32> to vector<1x128xf32>
      %cst_36 = arith.constant 7.812500e-03 : f32
      %43 = vector.broadcast %cst_36 : f32 to vector<1x128xf32>
      %44 = arith.mulf %42, %43 : vector<1x128xf32>
      %45 = arith.mulf %40, %40 : vector<128x128xf32>
      %cst_37 = arith.constant dense<0.000000e+00> : vector<128xf32>
      %46 = vector.multi_reduction <add>, %45, %cst_37 [0] : vector<128x128xf32> to vector<128xf32>
      %47 = vector.shape_cast %46 : vector<128xf32> to vector<1x128xf32>
      %cst_38 = arith.constant 7.812500e-03 : f32
      %48 = vector.broadcast %cst_38 : f32 to vector<1x128xf32>
      %49 = arith.mulf %47, %48 : vector<1x128xf32>
      %50 = arith.mulf %44, %44 : vector<1x128xf32>
      %51 = arith.subf %49, %50 : vector<1x128xf32>
      %cst_39 = arith.constant 0.000000e+00 : f32
      %52 = vector.broadcast %cst_39 : f32 to vector<1x128xf32>
      %53 = arith.maximumf %51, %52 : vector<1x128xf32>
      %c0_40 = arith.constant 0 : index
      %c0_41 = arith.constant 0 : index
      %54 = vector.load %arg4[%c0_40, %c0_41] : memref<1x128xf32, #tpu.memory_space<vmem>>, vector<1x128xf32>
      %cst_42 = arith.constant 9.99999974E-6 : f32
      %55 = vector.broadcast %cst_42 : f32 to vector<1x128xf32>
      %56 = arith.addf %53, %55 : vector<1x128xf32>
      %57 = math.rsqrt %56 : vector<1x128xf32>
      %58 = arith.mulf %54, %57 : vector<1x128xf32>
      %c0_43 = arith.constant 0 : index
      %c0_44 = arith.constant 0 : index
      %59 = vector.load %arg5[%c0_43, %c0_44] : memref<1x128xf32, #tpu.memory_space<vmem>>, vector<1x128xf32>
      %60 = arith.mulf %44, %58 : vector<1x128xf32>
      %61 = arith.subf %59, %60 : vector<1x128xf32>
      %62 = vector.broadcast %58 : vector<1x128xf32> to vector<128x128xf32>
      %63 = arith.mulf %40, %62 : vector<128x128xf32>
      %64 = vector.broadcast %61 : vector<1x128xf32> to vector<128x128xf32>
      %65 = arith.addf %63, %64 : vector<128x128xf32>
      %cst_45 = arith.constant 2.000000e-01 : f32
      %66 = vector.broadcast %cst_45 : f32 to vector<128x128xf32>
      %67 = arith.mulf %66, %65 : vector<128x128xf32>
      %68 = arith.maximumf %65, %67 : vector<128x128xf32>
      %c0_46 = arith.constant 0 : index
      %c0_47 = arith.constant 0 : index
      %69 = vector.load %arg6[%c0_46, %c0_47] : memref<128x128xf32, #tpu.memory_space<vmem>>, vector<128x128xf32>
      tpu.vector_store %arg6[%c0_46, %c0_47], %68 {strides = array<i32>} : memref<128x128xf32, #tpu.memory_space<vmem>>, vector<128x128xf32>,
    } else {
    }
    return
  }
  func.func @transform_0(%arg0: i32, %arg1: i32) -> (i32, i32, i32, i32) {
    %c0_i32 = arith.constant 0 : i32
    %c0_i32_0 = arith.constant 0 : i32
    %c0_i32_1 = arith.constant 0 : i32
    %c0_i32_2 = arith.constant 0 : i32
    return %arg1, %c0_i32, %c0_i32_0, %c0_i32_1 : i32, i32, i32, i32
  }
  func.func @transform_1(%arg0: i32, %arg1: i32) -> (i32, i32, i32) {
    %c0_i32 = arith.constant 0 : i32
    %c0_i32_0 = arith.constant 0 : i32
    return %arg1, %c0_i32, %arg0 : i32, i32, i32
  }
  func.func @transform_2(%arg0: i32, %arg1: i32) -> (i32, i32) {
    %c0_i32 = arith.constant 0 : i32
    %c0_i32_0 = arith.constant 0 : i32
    return %c0_i32, %arg0 : i32, i32
  }
  func.func @transform_3(%arg0: i32, %arg1: i32) -> (i32, i32) {
    %c0_i32 = arith.constant 0 : i32
    %c0_i32_0 = arith.constant 0 : i32
    return %c0_i32, %arg0 : i32, i32
  }
  func.func @transform_4(%arg0: i32, %arg1: i32) -> (i32, i32) {
    %c0_i32 = arith.constant 0 : i32
    %c0_i32_0 = arith.constant 0 : i32
    return %c0_i32, %arg0 : i32, i32
  }
}

</mosaic_0001>

<bundles_post_ra>
// kernel: downsample_block.1
= control target key start
LH: loop header
LB: loop body
LE: loop exit
PB: predicated region body
PF: predicated region fallthrough
CT: control target
= control target key end

     0   :  { %s1978_s15 = smov 0   ;;  %s1980_s16 = smov 0   ;;  %s2341_s0 = inlined_call_operand.vmem [shape: bf16[8,9,9,4], index: 0, kind: input, shape index: {}]   ;;  %s2342_s1 = inlined_call_operand.vmem [shape: bf16[16,4,128], index: 1, kind: input, shape index: {}]   ;;  %s2343_s2 = inlined_call_operand.vmem [shape: f32[1,128], index: 2, kind: input, shape index: {}]   ;;  %s2344_s3 = inlined_call_operand.vmem [shape: f32[1,128], index: 3, kind: input, shape index: {}]   ;;  %s2345_s4 = inlined_call_operand.vmem [shape: f32[128,128], index: 4, kind: output, shape index: {}]  }
   0x1   :  { %s1982_s17 = smov 0  }
   0x2 LB: > { %s23_s18 = sadd.s32 1, %s1946_s16  ;;  %p1599_p0 = scmp.ge.s32.totalorder %s1950_s17, 1  ;;  %s1950_s17 = sphi %s1982_s17, %s14_s17   ;;  %s1946_s16 = sphi %s1980_s16, %s2347_s16   ;;  %s1942_s15 = sphi %s1978_s15, %s2346_s15  }
   0x3   : > { %p24_p1 = scmp.ge.s32.totalorder %s23_s18, 4  ;;  %p208_p2 = scmp.lt.s32.totalorder %s1950_s17, 5 }
   0x5   : > { %s2349_s18 = smov (%p24_p1, %s23_s18), 0  ;;  %p209_p3 = pnand %p1599_p0, %p208_p2 }
   0x6   : > { %s1600_s19 = sshll.u32 (!%p209_p3), %s1942_s15, 1  ;;  %s1602_s20 = sshll.u32 (!%p209_p3), %s1942_s15, 2 }
   0x7   : > { %212 = sbr.rel (%p209_p3) target bundleno = 377 (0x179), region = 36  ;;  %p249_p4 = scmp.lt.s32.totalorder (!%p209_p3), %s1600_s19, 7 }
   0x8   : > { %p256_p5 = scmp.lt.s32.totalorder (!%p209_p3), %s1602_s20, 15  ;;  %p1604_p6 = scmp.ne.s32.totalorder (!%p209_p3), %s1942_s15, 0 }
   0xe   : > { %s2351_s19 = smov (!%p249_p4, %s1600_s19), 7  ;;  %s2353_s20 = smov (!%p256_p5, %s1602_s20), 15 }
   0xf   : > { %s1884_s21 = smul.u32 72, %s2351_s19  ;;  %s1603_s22 = sshll.u32 %s2353_s20, 1  ;;  %v1952_v0 = vmov (!%p1604_p6), 0.0  }
  0x10   : > { %s2008_s28 = scalar_lea.vmem %s2342_s1, %s1603_s22  ;;  %278 = sbr.rel (%p1604_p6) target bundleno = 24 (0x18), region = 40  ;;  %279 = vst [vmem:[#allocation2] sm:$0xff] (!%p1604_p6), %v1952_v0  ;;  %280 = vst [vmem:[#allocation2 + $0x8] sm:$0xff] (!%p1604_p6), %v1952_v0 }
  0x11   : > { %s2003_s25 = scalar_lea.vmem %s2341_s0, %s1884_s21  ;;  %281 = vst [vmem:[#allocation2 + $0x10] sm:$0xff] (!%p1604_p6), %v1952_v0  ;;  %282 = vst [vmem:[#allocation2 + $0x18] sm:$0xff] (!%p1604_p6), %v1952_v0 }
  0x12   : > { %283 = vst [vmem:[#allocation2 + $0x20] sm:$0xff] (!%p1604_p6), %v1952_v0  ;;  %284 = vst [vmem:[#allocation2 + $0x28] sm:$0xff] (!%p1604_p6), %v1952_v0 }
  0x13   : > { %285 = vst [vmem:[#allocation2 + $0x30] sm:$0xff] (!%p1604_p6), %v1952_v0  ;;  %286 = vst [vmem:[#allocation2 + $0x38] sm:$0xff] (!%p1604_p6), %v1952_v0 }
  0x14   : > { %287 = vst [vmem:[#allocation2 + $0x40] sm:$0xff] (!%p1604_p6), %v1952_v0  ;;  %288 = vst [vmem:[#allocation2 + $0x48] sm:$0xff] (!%p1604_p6), %v1952_v0 }
  0x15   : > { %289 = vst [vmem:[#allocation2 + $0x50] sm:$0xff] (!%p1604_p6), %v1952_v0  ;;  %290 = vst [vmem:[#allocation2 + $0x58] sm:$0xff] (!%p1604_p6), %v1952_v0 }
  0x16   : > { %291 = vst [vmem:[#allocation2 + $0x60] sm:$0xff] (!%p1604_p6), %v1952_v0  ;;  %292 = vst [vmem:[#allocation2 + $0x68] sm:$0xff] (!%p1604_p6), %v1952_v0 }
  0x17   : > { %293 = vst [vmem:[#allocation2 + $0x70] sm:$0xff] %v1952_v0  ;;  %294 = vst [vmem:[#allocation2 + $0x78] sm:$0xff] %v1952_v0 }
  0x18 PF: > { %v351_v1 = vld [vmem:[%s2008_s28] sm:$0x3]  ;;  %vm377_vm0 = vcmask 1041408   ;;  %v1654_v2 = vld [vmem:[%s2008_s28 + $0x4] sm:$0x3]  ;;  %vm352_vm1 = vcmask 31744  }
  0x19   : > { %1880 = vmatprep.subr.msk.bf16.mxu1 %vm377_vm0, %v351_v1  ;;  %1882 = vmatprep.subr.msk.bf16.mxu0 %vm377_vm0, %v1654_v2  ;;  %v379_v3 = vsel %vm377_vm0, %v351_v1, 0  ;;  %v873_v4 = vsel %vm377_vm0, %v1654_v2, 0  ;;  %v1910_v5 = vld [vmem:[%s2003_s25] ss:$8 sps:$4 sm:$0xff]   ;;  %v1912_v7 = vld [vmem:[%s2003_s25 + $0x10] ss:$8 sps:$4 sm:$0xff]  }
  0x1a   : > { %1745 = vmatpush3.bf16.msra.mxu1 %v379_v3  ;;  %1781 = vmatpush3.bf16.msra.mxu0 %v873_v4  ;;  %v1911_v6 = vld [vmem:[%s2003_s25 + $0x8] ss:$8 sps:$4 sm:$0xff]   ;;  %v1621_v8 = vld [vmem:[%s2008_s28 + $0x2] sm:$0x3]  ;;  %v1695_v11 = vld [vmem:[%s2008_s28 + $0x6] sm:$0x3] }
  0x1b   : > { %1746 = vmatprep.mubr.msk.bf16.mxu1 %vm352_vm1, %v1910_v5  ;;  %1782 = vmatprep.mubr.msk.bf16.mxu0 %vm352_vm1, %v1911_v6  ;;  %v1913_v9 = vld [vmem:[%s2003_s25 + $0x18] ss:$8 sps:$4 sm:$0xff]   ;;  %v690_v10 = vsel %vm377_vm0, %v1621_v8, 0  ;;  %v1183_v12 = vsel %vm377_vm0, %v1695_v11, 0  ;;  %v1915_v14 = vld [vmem:[%s2003_s25 + $0x28] ss:$8 sps:$4 sm:$0xff]  }
  0x1c   : > { %1881 = vmatprep.subr.msk.bf16.mxu1 %vm377_vm0, %v1621_v8  ;;  %v1914_v13 = vld [vmem:[%s2003_s25 + $0x20] ss:$8 sps:$4 sm:$0xff]   ;;  %1883 = vmatprep.subr.msk.bf16.mxu0 %vm377_vm0, %v1695_v11  ;;  %v1916_v15 = vld [vmem:[%s2003_s25 + $0x30] ss:$8 sps:$4 sm:$0xff]   ;;  %vm590_vm2 = vcmask 1046528   ;;  %p1704_p7 = scmp.ne.s32.totalorder %s1942_s15, 3 }
  0x1d   : > { %1747 = vmatmul.mubr.msk.bf16.vlgmr.msra.gmra.mrb[0].mxu1 %vm352_vm1, %v1912_v7  ;;  %1783 = vmatmul.mubr.msk.bf16.vlgmr.msra.gmra.mrb[0].mxu0 %vm352_vm1, %v1913_v9  ;;  %v1917_v16 = vld [vmem:[%s2003_s25 + $0x38] ss:$8 sps:$4 sm:$0xff]   ;;  %v1918_v17 = vld [vmem:[%s2003_s25 + $0x48] ss:$8 sps:$4 sm:$0xff]   ;;  %v495_v24 = vld [vmem:[%s2003_s25 + $0x4] sm:$0x1] }
  0x1e   : > { %1763 = vmatpush3.bf16.msra.mxu1 %v690_v10  ;;  %1799 = vmatpush3.bf16.msra.mxu0 %v1183_v12  ;;  %v1919_v18 = vld [vmem:[%s2003_s25 + $0x50] ss:$8 sps:$4 sm:$0xff]   ;;  %v1921_v20 = vld [vmem:[%s2003_s25 + $0x60] ss:$8 sps:$4 sm:$0xff]   ;;  %v497_v25 = vld [vmem:[%s2003_s25 + $0xc] sm:$0x1]  ;;  %v527_v29 = vunpack.c.l.bf16 %v495_v24 }
  0x1f   : > { %1750 = vmatprep.mubr.msk.bf16.mxu1 %vm352_vm1, %v1914_v13  ;;  %1786 = vmatprep.mubr.msk.bf16.mxu0 %vm352_vm1, %v1915_v14  ;;  %v1920_v19 = vld [vmem:[%s2003_s25 + $0x58] ss:$8 sps:$4 sm:$0xff]   ;;  %v1922_v21 = vld [vmem:[%s2003_s25 + $0x68] ss:$8 sps:$4 sm:$0xff]   ;;  %v529_v30 = vunpack.c.l.bf16 %v497_v25  ;;  %v1664_v31 = vld [vmem:[%s2003_s25 + $0xc] sm:$0x1] }
  0x20   : > { %v1923_v22 = vld [vmem:[%s2003_s25 + $0x70] ss:$8 sps:$4 sm:$0xff]   ;;  %v494_v23 = vld [vmem:[%s2003_s25] ss:$8 sps:$4 sm:$0xff]   ;;  %v1666_v32 = vld [vmem:[%s2003_s25 + $0x14] sm:$0x1]  ;;  %v1021_v38 = vunpack.c.l.bf16 %v1664_v31 }
  0x21   : > { %v526_v26 = vunpack.c.l.bf16 %v494_v23  ;;  %v528_v27 = vunpack.c.h.bf16 %v494_v23  ;;  %v1663_v28 = vld [vmem:[%s2003_s25 + $0x8] ss:$8 sps:$4 sm:$0xff]   ;;  %v1023_v39 = vunpack.c.l.bf16 %v1666_v32  ;;  %v499_v40 = vld [vmem:[%s2003_s25 + $0x14] sm:$0x1]  ;;  %v501_v41 = vld [vmem:[%s2003_s25 + $0x1c] sm:$0x1] }
  0x22   : > { %v1020_v33 = vunpack.c.l.bf16 %v1663_v28  ;;  %v1022_v34 = vunpack.c.h.bf16 %v1663_v28  ;;  %v498_v35 = vld [vmem:[%s2003_s25 + $0x10] ss:$8 sps:$4 sm:$0xff]   ;;  %v592_v42 = vrot.slane %v527_v29, 1  ;;  %v595_v43 = vrot.slane %v529_v30, 1  ;;  %v1668_v55 = vld [vmem:[%s2003_s25 + $0x1c] sm:$0x1] }
  0x23   : > { %v591_v36 = vrot.slane %v526_v26, 1  ;;  %v594_v37 = vrot.slane %v528_v27, 1  ;;  %v1085_v46 = vrot.slane %v1021_v38, 1  ;;  %v1088_v47 = vrot.slane %v1023_v39, 1  ;;  %v1667_v54 = vld [vmem:[%s2003_s25 + $0x18] ss:$8 sps:$4 sm:$0xff]  }
  0x24   : > { %v1084_v44 = vrot.slane %v1020_v33, 1  ;;  %v1087_v45 = vrot.slane %v1022_v34, 1  ;;  %v530_v48 = vunpack.c.l.bf16 %v498_v35  ;;  %v531_v49 = vunpack.c.l.bf16 %v499_v40  ;;  %v1670_v56 = vld [vmem:[%s2003_s25 + $0x24] sm:$0x1]  ;;  %v502_v61 = vld [vmem:[%s2003_s25 + $0x20] ss:$8 sps:$4 sm:$0xff]  }
  0x25   : > { %1751 = vmatmul.mubr.msk.bf16.gmra.mrb[4].mxu1 %vm352_vm1, %v1916_v15  ;;  %1787 = vmatmul.mubr.msk.bf16.gmra.mrb[4].mxu0 %vm352_vm1, %v1917_v16  ;;  %v593_v50 = vsel %vm590_vm2, %v591_v36, %v592_v42  ;;  %v596_v51 = vsel %vm590_vm2, %v594_v37, %v595_v43  ;;  %v532_v52 = vunpack.c.h.bf16 %v498_v35  ;;  %v533_v53 = vunpack.c.l.bf16 %v501_v41  ;;  %v503_v62 = vld [vmem:[%s2003_s25 + $0x24] sm:$0x1]  ;;  %v1924_v63 = vld [vmem:[%s2003_s25 + $0x78] ss:$8 sps:$4 sm:$0xff]   ;;  %v505_v9 = vld [vmem:[%s2003_s25 + $0x2c] sm:$0x1] }
  0x26   : > { %1754 = vmatprep.mubr.msk.bf16.mxu1 %vm352_vm1, %v1918_v17  ;;  %1790 = vmatprep.mubr.msk.bf16.mxu0 %vm352_vm1, %v1919_v18  ;;  %v655_v57 = vpack.c.bf16 %v596_v51, %v593_v50  ;;  %v1086_v58 = vsel %vm590_vm2, %v1084_v44, %v1085_v46  ;;  %v1089_v59 = vsel %vm590_vm2, %v1087_v45, %v1088_v47  ;;  %v597_v60 = vrot.slane %v530_v48, 1  ;;  %v1925_v4 = vld [vmem:[%s2003_s25 + $0x80] ss:$8 sps:$4 sm:$0xff]   ;;  %v1672_v15 = vld [vmem:[%s2003_s25 + $0x2c] sm:$0x1] }
  0x27   : > { %v1148_v0 = vpack.c.bf16 %v1089_v59, %v1086_v58  ;;  %v598_v1 = vrot.slane %v531_v49, 1  ;;  %v600_v2 = vrot.slane %v532_v52, 1  ;;  %v601_v3 = vrot.slane %v533_v53, 1  ;;  %v1671_v14 = vld [vmem:[%s2003_s25 + $0x28] ss:$8 sps:$4 sm:$0xff]  }
  0x28   : > { %v1024_v5 = vunpack.c.l.bf16 %v1667_v54  ;;  %v1025_v6 = vunpack.c.l.bf16 %v1668_v55  ;;  %v1026_v7 = vunpack.c.h.bf16 %v1667_v54  ;;  %v1027_v8 = vunpack.c.l.bf16 %v1670_v56  ;;  %v1674_v24 = vld [vmem:[%s2003_s25 + $0x34] sm:$0x1]  ;;  %v506_v29 = vld [vmem:[%s2003_s25 + $0x30] ss:$8 sps:$4 sm:$0xff]   ;;  %v509_v39 = vld [vmem:[%s2003_s25 + $0x3c] sm:$0x1] }
  0x29   : > { %v599_v10 = vsel %vm590_vm2, %v597_v60, %v598_v1  ;;  %v602_v11 = vsel %vm590_vm2, %v600_v2, %v601_v3  ;;  %v534_v12 = vunpack.c.l.bf16 %v502_v61  ;;  %v535_v13 = vunpack.c.l.bf16 %v503_v62  ;;  %v507_v34 = vld [vmem:[%s2003_s25 + $0x34] sm:$0x1]  ;;  %v1675_v40 = vld [vmem:[%s2003_s25 + $0x38] ss:$8 sps:$4 sm:$0xff]   ;;  %v1676_v45 = vld [vmem:[%s2003_s25 + $0x3c] sm:$0x1] }
  0x2a   : > { %v656_v16 = vpack.c.bf16 %v602_v11, %v599_v10  ;;  %v1090_v17 = vrot.slane %v1024_v5, 1  ;;  %v1091_v18 = vrot.slane %v1025_v6, 1  ;;  %v1028_v27 = vunpack.c.l.bf16 %v1671_v14  ;;  %v1678_v50 = vld [vmem:[%s2003_s25 + $0x44] sm:$0x1]  ;;  %v510_v55 = vld [vmem:[%s2003_s25 + $0x48] ss:$8 sps:$4 sm:$0xff]  }
  0x2b   : > { %v603_v23 = vrot.slane %v534_v12, 1  ;;  %v604_v26 = vrot.slane %v535_v13, 1  ;;  %v1029_v28 = vunpack.c.l.bf16 %v1672_v15  ;;  %v1030_v33 = vunpack.c.h.bf16 %v1671_v14  ;;  %v511_v60 = vld [vmem:[%s2003_s25 + $0x4c] sm:$0x1]  ;;  %v513_v1 = vld [vmem:[%s2003_s25 + $0x54] sm:$0x1] }
  0x2c   : > { %v1092_v25 = vsel %vm590_vm2, %v1090_v17, %v1091_v18  ;;  %v1031_v37 = vunpack.c.l.bf16 %v1674_v24  ;;  %v1096_v38 = vrot.slane %v1028_v27, 1  ;;  %v538_v44 = vunpack.c.l.bf16 %v506_v29  ;;  %v1679_v6 = vld [vmem:[%s2003_s25 + $0x50] ss:$8 sps:$4 sm:$0xff]   ;;  %v1680_v11 = vld [vmem:[%s2003_s25 + $0x54] sm:$0x1] }
  0x2d   : > { %1755 = vmatmul.mubr.msk.bf16.gmra.mrb[8].mxu1 %vm352_vm1, %v1920_v19  ;;  %1791 = vmatmul.mubr.msk.bf16.gmra.mrb[8].mxu0 %vm352_vm1, %v1921_v20  ;;  %v1093_v19 = vrot.slane %v1026_v7, 1  ;;  %v1094_v20 = vrot.slane %v1027_v8, 1  ;;  %v605_v36 = vsel %vm590_vm2, %v603_v23, %v604_v26  ;;  %v1097_v42 = vrot.slane %v1029_v28, 1 }
  0x2e   : > { %1758 = vmatprep.mubr.msk.bf16.mxu1 %vm352_vm1, %v1922_v21  ;;  %1794 = vmatprep.mubr.msk.bf16.mxu0 %vm352_vm1, %v1923_v22  ;;  %v536_v21 = vunpack.c.h.bf16 %v502_v61  ;;  %v537_v22 = vunpack.c.l.bf16 %v505_v9  ;;  %v1099_v43 = vrot.slane %v1030_v33, 1  ;;  %v1100_v47 = vrot.slane %v1031_v37, 1  ;;  %v1684_v37 = vld [vmem:[%s2003_s25 + $0x64] sm:$0x1] }
  0x2f   : > { %v1095_v30 = vsel %vm590_vm2, %v1093_v19, %v1094_v20  ;;  %v539_v48 = vunpack.c.l.bf16 %v507_v34  ;;  %v540_v49 = vunpack.c.h.bf16 %v506_v29  ;;  %v1098_v51 = vsel %vm590_vm2, %v1096_v38, %v1097_v42 }
  0x30   : > { %v606_v31 = vrot.slane %v536_v21, 1  ;;  %v607_v32 = vrot.slane %v537_v22, 1  ;;  %v1149_v35 = vpack.c.bf16 %v1095_v30, %v1092_v25  ;;  %v541_v52 = vunpack.c.l.bf16 %v509_v39  ;;  %v514_v21 = vld [vmem:[%s2003_s25 + $0x58] ss:$8 sps:$4 sm:$0xff]   ;;  %v515_v22 = vld [vmem:[%s2003_s25 + $0x5c] sm:$0x1] }
  0x31   : > { %v609_v53 = vrot.slane %v538_v44, 1  ;;  %v1032_v54 = vunpack.c.l.bf16 %v1675_v40  ;;  %v1101_v56 = vsel %vm590_vm2, %v1099_v43, %v1100_v47  ;;  %v612_v58 = vrot.slane %v540_v49, 1  ;;  %v518_v47 = vld [vmem:[%s2003_s25 + $0x68] ss:$8 sps:$4 sm:$0xff]  }
  0x32   : > { %v608_v41 = vsel %vm590_vm2, %v606_v31, %v607_v32  ;;  %v1033_v59 = vunpack.c.l.bf16 %v1676_v45  ;;  %v1150_v61 = vpack.c.bf16 %v1101_v56, %v1098_v51  ;;  %v613_v62 = vrot.slane %v541_v52, 1  ;;  %v517_v31 = vld [vmem:[%s2003_s25 + $0x64] sm:$0x1]  ;;  %v519_v52 = vld [vmem:[%s2003_s25 + $0x6c] sm:$0x1] }
  0x33   : > { %v657_v46 = vpack.c.bf16 %v608_v41, %v605_v36  ;;  %v1102_v3 = vrot.slane %v1032_v54, 1  ;;  %v542_v5 = vunpack.c.l.bf16 %v510_v55  ;;  %v543_v10 = vunpack.c.l.bf16 %v511_v60  ;;  %v1683_v36 = vld [vmem:[%s2003_s25 + $0x60] ss:$8 sps:$4 sm:$0xff]  }
  0x34   : > { %v614_v7 = vsel %vm590_vm2, %v612_v58, %v613_v62  ;;  %v544_v14 = vunpack.c.h.bf16 %v510_v55  ;;  %v545_v15 = vunpack.c.l.bf16 %v513_v1  ;;  %v1036_v20 = vunpack.c.l.bf16 %v1679_v6  ;;  %v1687_v62 = vld [vmem:[%s2003_s25 + $0x70] ss:$8 sps:$4 sm:$0xff]  }
  0x35   : > { %1759 = vmatmul.mubr.msk.bf16.gmra.mrb[12].mxu1 %vm352_vm1, %v1924_v63  ;;  %1795 = vmatmul.mubr.msk.bf16.gmra.mrb[12].mxu0 %vm352_vm1, %v1925_v4  ;;  %v1034_v63 = vunpack.c.h.bf16 %v1675_v40  ;;  %v1103_v4 = vrot.slane %v1033_v59, 1  ;;  %v615_v18 = vrot.slane %v542_v5, 1  ;;  %v616_v19 = vrot.slane %v543_v10, 1 }
  0x36   : > { %1764 = vmatprep.mubr.msk.bf16.mxu1 %vm352_vm1, %v655_v57  ;;  %1800 = vmatprep.mubr.msk.bf16.mxu0 %vm352_vm1, %v1148_v0  ;;  %v610_v57 = vrot.slane %v539_v48, 1  ;;  %v1035_v0 = vunpack.c.l.bf16 %v1678_v50  ;;  %v618_v24 = vrot.slane %v544_v14, 1  ;;  %v619_v25 = vrot.slane %v545_v15, 1 }
  0x37   : > { %v1105_v8 = vrot.slane %v1034_v63, 1  ;;  %v1104_v13 = vsel %vm590_vm2, %v1102_v3, %v1103_v4  ;;  %v1037_v26 = vunpack.c.l.bf16 %v1680_v11  ;;  %v617_v27 = vsel %vm590_vm2, %v615_v18, %v616_v19  ;;  %v1688_v3 = vld [vmem:[%s2003_s25 + $0x74] sm:$0x1]  ;;  %v523_v18 = vld [vmem:[%s2003_s25 + $0x7c] sm:$0x1] }
  0x38   : > { %v611_v2 = vsel %vm590_vm2, %v609_v53, %v610_v57  ;;  %v1106_v9 = vrot.slane %v1035_v0, 1  ;;  %v1038_v28 = vunpack.c.h.bf16 %v1679_v6  ;;  %v1108_v30 = vrot.slane %v1036_v20, 1  ;;  %v521_v57 = vld [vmem:[%s2003_s25 + $0x74] sm:$0x1] }
  0x39   : > { %v658_v12 = vpack.c.bf16 %v614_v7, %v611_v2  ;;  %v620_v32 = vsel %vm590_vm2, %v618_v24, %v619_v25  ;;  %v1109_v33 = vrot.slane %v1037_v26, 1  ;;  %v546_v34 = vunpack.c.l.bf16 %v514_v21  ;;  %v1691_v24 = vld [vmem:[%s2003_s25 + $0x80] ss:$8 sps:$4 sm:$0xff]  }
  0x3a   : > { %v1107_v17 = vsel %vm590_vm2, %v1105_v8, %v1106_v9  ;;  %v659_v38 = vpack.c.bf16 %v620_v32, %v617_v27  ;;  %v1111_v39 = vrot.slane %v1038_v28, 1  ;;  %v548_v41 = vunpack.c.h.bf16 %v514_v21  ;;  %v1690_v8 = vld [vmem:[%s2003_s25 + $0x7c] sm:$0x1] }
  0x3b   : > { %v1151_v23 = vpack.c.bf16 %v1107_v17, %v1104_v13  ;;  %v1110_v42 = vsel %vm590_vm2, %v1108_v30, %v1109_v33  ;;  %v549_v43 = vunpack.c.l.bf16 %v517_v31  ;;  %v621_v44 = vrot.slane %v546_v34, 1  ;;  %v522_v13 = vld [vmem:[%s2003_s25 + $0x78] ss:$8 sps:$4 sm:$0xff]   ;;  %v1694_v34 = vld [vmem:[%s2003_s25 + $0x8c] sm:$0x1] }
  0x3c   : > { %v624_v49 = vrot.slane %v548_v41, 1  ;;  %v1040_v50 = vunpack.c.l.bf16 %v1683_v36  ;;  %v1041_v51 = vunpack.c.l.bf16 %v1684_v37  ;;  %v1042_v56 = vunpack.c.h.bf16 %v1683_v36 }
  0x3d   : > { %1765 = vmatmul.mubr.msk.bf16.vlgmr.msra.gmra.mrb[0].mxu1 %vm352_vm1, %v656_v16  ;;  %1801 = vmatmul.mubr.msk.bf16.vlgmr.msra.gmra.mrb[0].mxu0 %vm352_vm1, %v1149_v35  ;;  %v1682_v16 = vld [vmem:[%s2003_s25 + $0x5c] sm:$0x1]  ;;  %v547_v35 = vunpack.c.l.bf16 %v515_v22  ;;  %v625_v55 = vrot.slane %v549_v43, 1  ;;  %v551_v1 = vunpack.c.l.bf16 %v519_v52  ;;  %v552_v2 = vunpack.c.h.bf16 %v518_v47 }
  0x3e   : > { %1768 = vmatprep.mubr.msk.bf16.mxu1 %vm352_vm1, %v657_v46  ;;  %1804 = vmatprep.mubr.msk.bf16.mxu0 %vm352_vm1, %v1150_v61  ;;  %v1039_v29 = vunpack.c.l.bf16 %v1682_v16  ;;  %v1686_v46 = vld [vmem:[%s2003_s25 + $0x6c] sm:$0x1]  ;;  %v1114_v59 = vrot.slane %v1040_v50, 1  ;;  %v1115_v60 = vrot.slane %v1041_v51, 1  ;;  %v550_v61 = vunpack.c.l.bf16 %v518_v47 }
  0x3f   : > { %v622_v45 = vrot.slane %v547_v35, 1  ;;  %v1043_v58 = vunpack.c.l.bf16 %v1686_v46  ;;  %v626_v63 = vsel %vm590_vm2, %v624_v49, %v625_v55  ;;  %v1117_v0 = vrot.slane %v1042_v56, 1 }
  0x40   : > { %v1112_v40 = vrot.slane %v1039_v29, 1  ;;  %v1116_v5 = vsel %vm590_vm2, %v1114_v59, %v1115_v60  ;;  %v553_v7 = vunpack.c.l.bf16 %v521_v57  ;;  %v627_v9 = vrot.slane %v550_v61, 1  ;;  %v1692_v29 = vld [vmem:[%s2003_s25 + $0x84] sm:$0x1]  ;;  %v297_v57 = vld [vmem:[#allocation2 + $0x10] sm:$0xff]  ;;  %v298_v60 = vld [vmem:[#allocation2 + $0x18] sm:$0xff] }
  0x41   : > { %v623_v54 = vsel %vm590_vm2, %v621_v44, %v622_v45  ;;  %v1118_v6 = vrot.slane %v1043_v58, 1  ;;  %v628_v10 = vrot.slane %v551_v1, 1  ;;  %v630_v11 = vrot.slane %v552_v2, 1  ;;  %v295_v58 = vld [vmem:[#allocation2] sm:$0xff] }
  0x42   : > { %v1113_v48 = vsel %vm590_vm2, %v1111_v39, %v1112_v40  ;;  %v660_v4 = vpack.c.bf16 %v626_v63, %v623_v54  ;;  %v631_v15 = vrot.slane %v553_v7, 1  ;;  %v1045_v16 = vunpack.c.l.bf16 %v1688_v3 }
  0x43   : > { %v1152_v53 = vpack.c.bf16 %v1113_v48, %v1110_v42  ;;  %v1119_v14 = vsel %vm590_vm2, %v1117_v0, %v1118_v6  ;;  %v1046_v17 = vunpack.c.h.bf16 %v1687_v62  ;;  %v629_v20 = vsel %vm590_vm2, %v627_v9, %v628_v10  ;;  %v296_v0 = vld [vmem:[#allocation2 + $0x8] sm:$0xff] }
  0x44   : > { %v1153_v19 = vpack.c.bf16 %v1119_v14, %v1116_v5  ;;  %v1047_v21 = vunpack.c.l.bf16 %v1690_v8  ;;  %v632_v25 = vsel %vm590_vm2, %v630_v11, %v631_v15  ;;  %v1121_v26 = vrot.slane %v1045_v16, 1  ;;  %v299_v14 = vld [vmem:[#allocation2 + $0x20] sm:$0xff]  ;;  %v302_v16 = vld [vmem:[#allocation2 + $0x38] sm:$0xff] }
  0x45   : > { %1769 = vmatmul.mubr.msk.bf16.gmra.mrb[4].mxu1 %vm352_vm1, %v658_v12  ;;  %1805 = vmatmul.mubr.msk.bf16.gmra.mrb[4].mxu0 %vm352_vm1, %v1151_v23  ;;  %v1044_v12 = vunpack.c.l.bf16 %v1687_v62  ;;  %v525_v23 = vld [vmem:[%s2003_s25 + $0x84] sm:$0x1]  ;;  %v1123_v27 = vrot.slane %v1046_v17, 1  ;;  %v554_v28 = vunpack.c.l.bf16 %v522_v13  ;;  %v661_v30 = vpack.c.bf16 %v632_v25, %v629_v20  ;;  %v300_v20 = vld [vmem:[#allocation2 + $0x28] sm:$0xff] }
  0x46   : > { %1772 = vmatprep.mubr.msk.bf16.mxu1 %vm352_vm1, %v659_v38  ;;  %1808 = vmatprep.mubr.msk.bf16.mxu0 %vm352_vm1, %v1152_v53  ;;  %v1124_v31 = vrot.slane %v1047_v21, 1  ;;  %v555_v32 = vunpack.c.l.bf16 %v523_v18  ;;  %v556_v33 = vunpack.c.h.bf16 %v522_v13  ;;  %v557_v36 = vunpack.c.l.bf16 %v525_v23  ;;  %v301_v13 = vld [vmem:[#allocation2 + $0x30] sm:$0xff] }
  0x47   : > { %v1120_v22 = vrot.slane %v1044_v12, 1  ;;  %v633_v37 = vrot.slane %v554_v28, 1  ;;  %v1048_v38 = vunpack.c.l.bf16 %v1691_v24  ;;  %v1049_v42 = vunpack.c.l.bf16 %v1692_v29 }
  0x48   : > { %v1125_v39 = vsel %vm590_vm2, %v1123_v27, %v1124_v31  ;;  %v634_v40 = vrot.slane %v555_v32, 1  ;;  %v636_v41 = vrot.slane %v556_v33, 1  ;;  %v637_v44 = vrot.slane %v557_v36, 1  ;;  %v305_v33 = vld [vmem:[#allocation2 + $0x50] sm:$0xff]  ;;  %v306_v36 = vld [vmem:[#allocation2 + $0x58] sm:$0xff] }
  0x49   : > { %v1122_v35 = vsel %vm590_vm2, %v1120_v22, %v1121_v26  ;;  %v1050_v45 = vunpack.c.h.bf16 %v1691_v24  ;;  %v1051_v46 = vunpack.c.l.bf16 %v1694_v34  ;;  %v1126_v48 = vrot.slane %v1048_v38, 1  ;;  %v303_v34 = vld [vmem:[#allocation2 + $0x40] sm:$0xff] }
  0x4a   : > { %v1154_v43 = vpack.c.bf16 %v1125_v39, %v1122_v35  ;;  %v635_v47 = vsel %vm590_vm2, %v633_v37, %v634_v40  ;;  %v1127_v49 = vrot.slane %v1049_v42, 1  ;;  %v638_v50 = vsel %vm590_vm2, %v636_v41, %v637_v44  ;;  %v304_v39 = vld [vmem:[#allocation2 + $0x48] sm:$0xff] }
  0x4b   : > { %v1129_v51 = vrot.slane %v1050_v45, 1  ;;  %v1130_v52 = vrot.slane %v1051_v46, 1  ;;  %v662_v53 = vpack.c.bf16 %v638_v50, %v635_v47 }
  0x4c   : > { %v1128_v54 = vsel %vm590_vm2, %v1126_v48, %v1127_v49 }
  0x4d   : > { %1773 = vmatmul.mubr.msk.bf16.gmra.mrb[8].mxu1 %vm352_vm1, %v660_v4  ;;  %1809 = vmatmul.mubr.msk.bf16.gmra.mrb[8].mxu0 %vm352_vm1, %v1153_v19  ;;  %v1131_v55 = vsel %vm590_vm2, %v1129_v51, %v1130_v52 }
  0x4e   : > { %1776 = vmatprep.mubr.msk.bf16.mxu1 %vm352_vm1, %v661_v30  ;;  %1812 = vmatprep.mubr.msk.bf16.mxu0 %vm352_vm1, %v1154_v43  ;;  %v1155_v56 = vpack.c.bf16 %v1131_v55, %v1128_v54  ;;  %v307_v54 = vld [vmem:[#allocation2 + $0x60] sm:$0xff] }
  0x55   : > { %1777 = vmatmul.mubr.msk.bf16.gmra.mrb[12].mxu1 %vm352_vm1, %v662_v53  ;;  %1813 = vmatmul.mubr.msk.bf16.gmra.mrb[12].mxu0 %vm352_vm1, %v1155_v56  ;;  %v309_v53 = vld [vmem:[#allocation2 + $0x70] sm:$0xff]  ;;  %v310_v56 = vld [vmem:[#allocation2 + $0x78] sm:$0xff] }
 0x110   : > { %v1766_v59 = vpop.f32.mrb[0].mxu1  ;;  %v1802_v62 = vpop.f32.mrb[0].mxu0 }
 0x111   : > { %v1816_v61 = vadd.f32 %v1766_v59, %v297_v57  ;;  %v726_v63 = vpop.f32.mrb[1].mxu1  ;;  %v1219_v2 = vpop.f32.mrb[1].mxu0  ;;  %v308_v59 = vld [vmem:[#allocation2 + $0x68] sm:$0xff] }
 0x112   : > { %v1818_v1 = vadd.f32 %v726_v63, %v295_v58  ;;  %v1767_v3 = vpop.f32.mrb[2].mxu1  ;;  %v1803_v6 = vpop.f32.mrb[2].mxu0 }
 0x113   : > { %v1817_v4 = vadd.f32 %v1816_v61, %v1802_v62  ;;  %v1820_v5 = vadd.f32 %v1767_v3, %v298_v60  ;;  %v729_v7 = vpop.f32.mrb[3].mxu1  ;;  %v1222_v10 = vpop.f32.mrb[3].mxu0 }
 0x114   : > { %v1819_v8 = vadd.f32 %v1818_v1, %v1219_v2  ;;  %v1822_v9 = vadd.f32 %v729_v7, %v296_v0 }
 0x115   : > { %1300 = vst [vmem:[#allocation2 + $0x10] sm:$0xff] %v1817_v4  ;;  %v1821_v11 = vadd.f32 %v1820_v5, %v1803_v6 }
 0x116   : > { %1298 = vst [vmem:[#allocation2] sm:$0xff] %v1819_v8  ;;  %v1823_v12 = vadd.f32 %v1822_v9, %v1222_v10 }
 0x117   : > { %1301 = vst [vmem:[#allocation2 + $0x18] sm:$0xff] %v1821_v11 }
 0x118   : > { %1299 = vst [vmem:[#allocation2 + $0x8] sm:$0xff] %v1823_v12  ;;  %v1770_v15 = vpop.f32.mrb[4].mxu1  ;;  %v1806_v18 = vpop.f32.mrb[4].mxu0 }
 0x119   : > { %v1824_v17 = vadd.f32 %v1770_v15, %v301_v13  ;;  %v742_v19 = vpop.f32.mrb[5].mxu1  ;;  %v1235_v22 = vpop.f32.mrb[5].mxu0 }
 0x11a   : > { %v1826_v21 = vadd.f32 %v742_v19, %v299_v14  ;;  %v1771_v23 = vpop.f32.mrb[6].mxu1  ;;  %v1807_v26 = vpop.f32.mrb[6].mxu0 }
 0x11b   : > { %v1825_v24 = vadd.f32 %v1824_v17, %v1806_v18  ;;  %v1828_v25 = vadd.f32 %v1771_v23, %v302_v16  ;;  %v745_v27 = vpop.f32.mrb[7].mxu1  ;;  %v1238_v30 = vpop.f32.mrb[7].mxu0 }
 0x11c   : > { %v1827_v28 = vadd.f32 %v1826_v21, %v1235_v22  ;;  %v1830_v29 = vadd.f32 %v745_v27, %v300_v20  ;;  %v2156_v11 = vld [vmem:[#allocation2 + $0x10] sm:$0xff] (!%p1704_p7) }
 0x11d   : > { %1304 = vst [vmem:[#allocation2 + $0x30] sm:$0xff] %v1825_v24  ;;  %v1829_v31 = vadd.f32 %v1828_v25, %v1807_v26  ;;  %v2152_v9 = vld [vmem:[#allocation2] sm:$0xff] (!%p1704_p7)  ;;  %v1358_v16 = vmul.f32 (!%p1704_p7), %v2156_v11, %v2156_v11 }
 0x11e   : > { %1302 = vst [vmem:[#allocation2 + $0x20] sm:$0xff] %v1827_v28  ;;  %v1831_v32 = vadd.f32 %v1830_v29, %v1238_v30  ;;  %v2158_v12 = vld [vmem:[#allocation2 + $0x18] sm:$0xff] (!%p1704_p7)  ;;  %v1356_v14 = vmul.f32 (!%p1704_p7), %v2152_v9, %v2152_v9 }
 0x11f   : > { %1305 = vst [vmem:[#allocation2 + $0x38] sm:$0xff] %v1829_v31  ;;  %v2154_v10 = vld [vmem:[#allocation2 + $0x8] sm:$0xff] (!%p1704_p7)  ;;  %v1359_v19 = vmul.f32 (!%p1704_p7), %v2158_v12, %v2158_v12 }
 0x120   : > { %1303 = vst [vmem:[#allocation2 + $0x28] sm:$0xff] %v1831_v32  ;;  %v1774_v35 = vpop.f32.mrb[8].mxu1  ;;  %v1810_v42 = vpop.f32.mrb[8].mxu0  ;;  %v1334_v13 = vadd.f32 (!%p1704_p7), %v2154_v10, %v2152_v9  ;;  %v1357_v15 = vmul.f32 (!%p1704_p7), %v2154_v10, %v2154_v10 }
 0x121   : > { %v1832_v37 = vadd.f32 %v1774_v35, %v305_v33  ;;  %v758_v38 = vpop.f32.mrb[9].mxu1  ;;  %v1251_v46 = vpop.f32.mrb[9].mxu0 }
 0x122   : > { %v1834_v40 = vadd.f32 %v758_v38, %v303_v34  ;;  %v1775_v41 = vpop.f32.mrb[10].mxu1  ;;  %v1811_v49 = vpop.f32.mrb[10].mxu0  ;;  %v1335_v18 = vadd.f32 (!%p1704_p7), %v1334_v13, %v2156_v11  ;;  %v1372_v20 = vadd.f32 (!%p1704_p7), %v1357_v15, %v1356_v14 }
 0x123   : > { %v1836_v43 = vadd.f32 %v1775_v41, %v306_v36  ;;  %v761_v44 = vpop.f32.mrb[11].mxu1  ;;  %v1833_v45 = vadd.f32 %v1832_v37, %v1810_v42  ;;  %v1254_v51 = vpop.f32.mrb[11].mxu0 }
 0x124   : > { %v1838_v47 = vadd.f32 %v761_v44, %v304_v39  ;;  %v1835_v48 = vadd.f32 %v1834_v40, %v1251_v46  ;;  %v1336_v22 = vadd.f32 (!%p1704_p7), %v1335_v18, %v2158_v12  ;;  %v1373_v24 = vadd.f32 (!%p1704_p7), %v1372_v20, %v1358_v16  ;;  %v2178_v25 = vld [vmem:[#allocation2 + $0x30] sm:$0xff] (!%p1704_p7) }
 0x125   : > { %1308 = vst [vmem:[#allocation2 + $0x50] sm:$0xff] %v1833_v45  ;;  %v1837_v50 = vadd.f32 %v1836_v43, %v1811_v49  ;;  %v2168_v17 = vld [vmem:[#allocation2 + $0x20] sm:$0xff] (!%p1704_p7)  ;;  %v1362_v31 = vmul.f32 (!%p1704_p7), %v2178_v25, %v2178_v25 }
 0x126   : > { %1306 = vst [vmem:[#allocation2 + $0x40] sm:$0xff] %v1835_v48  ;;  %v1839_v52 = vadd.f32 %v1838_v47, %v1254_v51  ;;  %v1360_v23 = vmul.f32 (!%p1704_p7), %v2168_v17, %v2168_v17  ;;  %v1337_v26 = vadd.f32 (!%p1704_p7), %v1336_v22, %v2168_v17  ;;  %v1374_v28 = vadd.f32 (!%p1704_p7), %v1373_v24, %v1359_v19  ;;  %v2183_v29 = vld [vmem:[#allocation2 + $0x38] sm:$0xff] (!%p1704_p7) }
 0x127   : > { %1309 = vst [vmem:[#allocation2 + $0x58] sm:$0xff] %v1837_v50  ;;  %v2173_v21 = vld [vmem:[#allocation2 + $0x28] sm:$0xff] (!%p1704_p7)  ;;  %v1363_v35 = vmul.f32 (!%p1704_p7), %v2183_v29, %v2183_v29 }
 0x128   : > { %1307 = vst [vmem:[#allocation2 + $0x48] sm:$0xff] %v1839_v52  ;;  %v1778_v55 = vpop.f32.mrb[12].mxu1  ;;  %v1814_v60 = vpop.f32.mrb[12].mxu0  ;;  %v1361_v27 = vmul.f32 (!%p1704_p7), %v2173_v21, %v2173_v21  ;;  %v1338_v30 = vadd.f32 (!%p1704_p7), %v1337_v26, %v2173_v21  ;;  %v1375_v32 = vadd.f32 (!%p1704_p7), %v1374_v28, %v1360_v23 }
 0x129   : > { %v1840_v57 = vadd.f32 %v1778_v55, %v309_v53  ;;  %v774_v58 = vpop.f32.mrb[13].mxu1  ;;  %v1267_v0 = vpop.f32.mrb[13].mxu0 }
 0x12a   : > { %v1842_v61 = vadd.f32 %v774_v58, %v307_v54  ;;  %v1779_v62 = vpop.f32.mrb[14].mxu1  ;;  %v1815_v4 = vpop.f32.mrb[14].mxu0  ;;  %1317 = sbr.rel (%p1704_p7) target bundleno = 377 (0x179), region = 44  ;;  %v1339_v34 = vadd.f32 (!%p1704_p7), %v1338_v30, %v2178_v25  ;;  %v1376_v36 = vadd.f32 (!%p1704_p7), %v1375_v32, %v1361_v27 }
 0x12b   : > { %v1841_v63 = vadd.f32 %v1840_v57, %v1814_v60  ;;  %v1844_v1 = vadd.f32 %v1779_v62, %v310_v56  ;;  %v777_v2 = vpop.f32.mrb[15].mxu1  ;;  %v1270_v7 = vpop.f32.mrb[15].mxu0 }
 0x12c   : > { %v1843_v3 = vadd.f32 %v1842_v61, %v1267_v0  ;;  %v1846_v5 = vadd.f32 %v777_v2, %v308_v59  ;;  %v1340_v38 = vadd.f32 (!%p1704_p7), %v1339_v34, %v2183_v29  ;;  %v1377_v40 = vadd.f32 (!%p1704_p7), %v1376_v36, %v1362_v31  ;;  %v2198_v41 = vld [vmem:[#allocation2 + $0x50] sm:$0xff] (!%p1704_p7)  ;;  %v1397_v36 = vld [vmem:[%s2343_s2] sm:$0x1] (!%p1704_p7) }
 0x12d   : > { %1312 = vst [vmem:[#allocation2 + $0x70] sm:$0xff] %v1841_v63  ;;  %v1845_v6 = vadd.f32 %v1844_v1, %v1815_v4  ;;  %v2188_v33 = vld [vmem:[#allocation2 + $0x40] sm:$0xff] (!%p1704_p7)  ;;  %v1366_v47 = vmul.f32 (!%p1704_p7), %v2198_v41, %v2198_v41  ;;  %v1405_v34 = vlaneseq (!%p1704_p7) }
 0x12e   : > { %1310 = vst [vmem:[#allocation2 + $0x60] sm:$0xff] %v1843_v3  ;;  %v1847_v8 = vadd.f32 %v1846_v5, %v1270_v7  ;;  %v1364_v39 = vmul.f32 (!%p1704_p7), %v2188_v33, %v2188_v33  ;;  %v1341_v42 = vadd.f32 (!%p1704_p7), %v1340_v38, %v2188_v33  ;;  %v1378_v44 = vadd.f32 (!%p1704_p7), %v1377_v40, %v1363_v35  ;;  %v2203_v45 = vld [vmem:[#allocation2 + $0x58] sm:$0xff] (!%p1704_p7) }
 0x12f   : > { %1313 = vst [vmem:[#allocation2 + $0x78] sm:$0xff] %v1845_v6  ;;  %v2193_v37 = vld [vmem:[#allocation2 + $0x48] sm:$0xff] (!%p1704_p7)  ;;  %v1367_v51 = vmul.f32 (!%p1704_p7), %v2203_v45, %v2203_v45  ;;  %v1406_v35 = vshrl.u32 (!%p1704_p7), %v1405_v34, 7 }
 0x130   : > { %1311 = vst [vmem:[#allocation2 + $0x68] sm:$0xff] %v1847_v8  ;;  %v1365_v43 = vmul.f32 (!%p1704_p7), %v2193_v37, %v2193_v37  ;;  %v1342_v46 = vadd.f32 (!%p1704_p7), %v1341_v42, %v2193_v37  ;;  %v1379_v48 = vadd.f32 (!%p1704_p7), %v1378_v44, %v1364_v39  ;;  %v1401_v42 = vld [vmem:[%s2344_s3] sm:$0x1] (!%p1704_p7) }
 0x131   : > { %v1407_v38 = vsub.s32 0, %v1406_v35 }
 0x132   : > { %v1343_v50 = vadd.f32 %v1342_v46, %v2198_v41  ;;  %v1380_v52 = vadd.f32 %v1379_v48, %v1365_v43 }
 0x134   : > { %v1344_v54 = vadd.f32 %v1343_v50, %v2203_v45  ;;  %v1381_v56 = vadd.f32 %v1380_v52, %v1366_v47  ;;  %v2216_v57 = vld [vmem:[#allocation2 + $0x70] sm:$0xff] }
 0x135   : > { %v2208_v49 = vld [vmem:[#allocation2 + $0x60] sm:$0xff]  ;;  %v1370_v63 = vmul.f32 %v2216_v57, %v2216_v57 }
 0x136   : > { %v1368_v55 = vmul.f32 %v2208_v49, %v2208_v49  ;;  %v1345_v58 = vadd.f32 %v1344_v54, %v2208_v49  ;;  %v1382_v60 = vadd.f32 %v1381_v56, %v1367_v51  ;;  %v2219_v61 = vld [vmem:[#allocation2 + $0x78] sm:$0xff] }
 0x137   : > { %v1331_v53 = vld [vmem:[#allocation2 + $0x68] sm:$0xff]  ;;  %v1371_v2 = vmul.f32 %v2219_v61, %v2219_v61 }
 0x138   : > { %v1369_v59 = vmul.f32 %v1331_v53, %v1331_v53  ;;  %v1346_v62 = vadd.f32 %v1345_v58, %v1331_v53  ;;  %v1383_v0 = vadd.f32 %v1382_v60, %v1368_v55 }
 0x13a   : > { %v1347_v1 = vadd.f32 %v1346_v62, %v2216_v57  ;;  %v1384_v3 = vadd.f32 %v1383_v0, %v1369_v59 }
 0x13c   : > { %v1348_v4 = vadd.f32 %v1347_v1, %v2219_v61  ;;  %v1385_v5 = vadd.f32 %v1384_v3, %v1370_v63 }
 0x13e   : > { %v1349_v6 = vrot.slane %v1348_v4, 4  ;;  %v1386_v7 = vadd.f32 %v1385_v5, %v1371_v2 }
 0x140   : > { %v1350_v8 = vadd.f32 %v1349_v6, %v1348_v4  ;;  %v1387_v13 = vrot.slane %v1386_v7, 4 }
 0x142   : > { %v1351_v14 = vrot.slane %v1350_v8, 2  ;;  %v1388_v15 = vadd.f32 %v1387_v13, %v1386_v7 }
 0x144   : > { %v1352_v16 = vadd.f32 %v1351_v14, %v1350_v8  ;;  %v1389_v18 = vrot.slane %v1388_v15, 2 }
 0x146   : > { %v1353_v19 = vrot.slane %v1352_v16, 1  ;;  %v1390_v20 = vadd.f32 %v1389_v18, %v1388_v15 }
 0x148   : > { %v1354_v22 = vadd.f32 %v1353_v19, %v1352_v16  ;;  %v1391_v23 = vrot.slane %v1390_v20, 1 }
 0x14a   : > { %v1355_v24 = vmul.f32 0.0078125, %v1354_v22  ;;  %v1392_v26 = vadd.f32 %v1391_v23, %v1390_v20 }
 0x14c   : > { %v1394_v27 = vmul.f32 %v1355_v24, %v1355_v24  ;;  %v1393_v28 = vmul.f32 0.0078125, %v1392_v26 }
 0x14e   : > { %v1395_v30 = vsub.f32 %v1393_v28, %v1394_v27 }
 0x150   : > { %v1396_v31 = vmax.f32 %v1395_v30, 0.0 }
 0x152   : > { %v1398_v32 = vadd.f32 1e-05, %v1396_v31 }
 0x154   : > { %1926 = vrsqrt.f32 %v1398_v32 }
 0x15e   : > { %v1927_v39 = vpop.eup %1926 }
 0x15f   : > { %v1400_v40 = vmul.f32 %v1927_v39, %v1397_v36 }
 0x161   : > { %v1402_v43 = vmul.f32 %v1400_v40, %v1355_v24  ;;  %v2233_v44 = vrot.slane %v1400_v40, %v1407_v38 }
 0x163   : > { %v1403_v46 = vsub.f32 %v1401_v42, %v1402_v43  ;;  %v1410_v47 = vmul.f32 %v2233_v44, %v2152_v9  ;;  %v1411_v48 = vmul.f32 %v2233_v44, %v2154_v10  ;;  %v1412_v50 = vmul.f32 %v2233_v44, %v2156_v11 }
 0x164   : > { %v1413_v51 = vmul.f32 %v2233_v44, %v2158_v12  ;;  %v1414_v52 = vmul.f32 %v2233_v44, %v2168_v17  ;;  %v1415_v54 = vmul.f32 %v2233_v44, %v2173_v21  ;;  %v1416_v55 = vmul.f32 %v2233_v44, %v2178_v25 }
 0x165   : > { %v2249_v56 = vrot.slane %v1403_v46, %v1407_v38  ;;  %v1417_v9 = vmul.f32 %v2233_v44, %v2183_v29  ;;  %v1418_v10 = vmul.f32 %v2233_v44, %v2188_v33  ;;  %v1419_v11 = vmul.f32 %v2233_v44, %v2193_v37 }
 0x166   : > { %v1420_v12 = vmul.f32 %v2233_v44, %v2198_v41  ;;  %v1421_v17 = vmul.f32 %v2233_v44, %v2203_v45  ;;  %v1422_v21 = vmul.f32 %v2233_v44, %v2208_v49  ;;  %v1423_v25 = vmul.f32 %v2233_v44, %v1331_v53 }
 0x167   : > { %v1432_v58 = vadd.f32 %v2249_v56, %v1410_v47  ;;  %v1433_v29 = vadd.f32 %v2249_v56, %v1411_v48  ;;  %v1434_v33 = vadd.f32 %v2249_v56, %v1412_v50  ;;  %v1435_v59 = vadd.f32 %v2249_v56, %v1413_v51 }
 0x168   : > { %v1436_v37 = vadd.f32 %v2249_v56, %v1414_v52  ;;  %v1437_v41 = vadd.f32 %v2249_v56, %v1415_v54  ;;  %v1438_v60 = vadd.f32 %v2249_v56, %v1416_v55  ;;  %v1439_v45 = vadd.f32 %v2249_v56, %v1417_v9 }
 0x169   : > { %v1448_v62 = vmul.f32 0.2, %v1432_v58  ;;  %v1449_v49 = vmul.f32 0.2, %v1433_v29  ;;  %v1450_v63 = vmul.f32 0.2, %v1434_v33  ;;  %v1440_v53 = vadd.f32 %v2249_v56, %v1418_v10 }
 0x16a   : > { %v1451_v0 = vmul.f32 0.2, %v1435_v59  ;;  %v1452_v1 = vmul.f32 0.2, %v1436_v37  ;;  %v1453_v2 = vmul.f32 0.2, %v1437_v41  ;;  %v1441_v3 = vadd.f32 %v2249_v56, %v1419_v11 }
 0x16b   : > { %v1464_v4 = vmax.f32 %v1432_v58, %v1448_v62  ;;  %v1465_v5 = vmax.f32 %v1433_v29, %v1449_v49  ;;  %v1466_v6 = vmax.f32 %v1434_v33, %v1450_v63  ;;  %v1454_v7 = vmul.f32 0.2, %v1438_v60 }
 0x16c   : > { %v1467_v8 = vmax.f32 %v1435_v59, %v1451_v0  ;;  %v1468_v13 = vmax.f32 %v1436_v37, %v1452_v1  ;;  %v1469_v14 = vmax.f32 %v1437_v41, %v1453_v2  ;;  %v1455_v15 = vmul.f32 0.2, %v1439_v45 }
 0x16d   : > { %1480 = vst [vmem:[%s2345_s4] sm:$0xff] %v1464_v4  ;;  %1481 = vst [vmem:[%s2345_s4 + $0x8] sm:$0xff] %v1465_v5  ;;  %v1470_v16 = vmax.f32 %v1438_v60, %v1454_v7  ;;  %v1456_v18 = vmul.f32 0.2, %v1440_v53  ;;  %v1457_v19 = vmul.f32 0.2, %v1441_v3  ;;  %v1442_v20 = vadd.f32 %v2249_v56, %v1420_v12 }
 0x16e   : > { %1482 = vst [vmem:[%s2345_s4 + $0x10] sm:$0xff] %v1466_v6  ;;  %1483 = vst [vmem:[%s2345_s4 + $0x18] sm:$0xff] %v1467_v8  ;;  %v1471_v22 = vmax.f32 %v1439_v45, %v1455_v15  ;;  %v1443_v23 = vadd.f32 %v2249_v56, %v1421_v17  ;;  %v1444_v24 = vadd.f32 %v2249_v56, %v1422_v21 }
 0x16f   : > { %1484 = vst [vmem:[%s2345_s4 + $0x20] sm:$0xff] %v1468_v13  ;;  %1485 = vst [vmem:[%s2345_s4 + $0x28] sm:$0xff] %v1469_v14  ;;  %v1445_v26 = vadd.f32 %v2249_v56, %v1423_v25  ;;  %v1472_v27 = vmax.f32 %v1440_v53, %v1456_v18  ;;  %v1473_v28 = vmax.f32 %v1441_v3, %v1457_v19  ;;  %v1458_v30 = vmul.f32 0.2, %v1442_v20 }
 0x170   : > { %1486 = vst [vmem:[%s2345_s4 + $0x30] sm:$0xff] %v1470_v16  ;;  %v1424_v31 = vmul.f32 %v2233_v44, %v2216_v57  ;;  %1487 = vst [vmem:[%s2345_s4 + $0x38] sm:$0xff] %v1471_v22  ;;  %v1459_v32 = vmul.f32 0.2, %v1443_v23  ;;  %v1460_v34 = vmul.f32 0.2, %v1444_v24  ;;  %v1425_v36 = vmul.f32 %v2233_v44, %v2219_v61 }
 0x171   : > { %v1461_v35 = vmul.f32 0.2, %v1445_v26  ;;  %1488 = vst [vmem:[%s2345_s4 + $0x40] sm:$0xff] %v1472_v27  ;;  %1489 = vst [vmem:[%s2345_s4 + $0x48] sm:$0xff] %v1473_v28  ;;  %v1474_v38 = vmax.f32 %v1442_v20, %v1458_v30 }
 0x172   : > { %v1446_v57 = vadd.f32 %v2249_v56, %v1424_v31  ;;  %v1475_v39 = vmax.f32 %v1443_v23, %v1459_v32  ;;  %v1476_v40 = vmax.f32 %v1444_v24, %v1460_v34  ;;  %v1447_v43 = vadd.f32 %v2249_v56, %v1425_v36 }
 0x173   : > { %v1477_v42 = vmax.f32 %v1445_v26, %v1461_v35  ;;  %1490 = vst [vmem:[%s2345_s4 + $0x50] sm:$0xff] %v1474_v38 }
 0x174   : > { %v1462_v61 = vmul.f32 0.2, %v1446_v57  ;;  %1491 = vst [vmem:[%s2345_s4 + $0x58] sm:$0xff] %v1475_v39  ;;  %1492 = vst [vmem:[%s2345_s4 + $0x60] sm:$0xff] %v1476_v40  ;;  %v1463_v44 = vmul.f32 0.2, %v1447_v43 }
 0x175   : > { %1493 = vst [vmem:[%s2345_s4 + $0x68] sm:$0xff] %v1477_v42 }
 0x176   : > { %v1478_v46 = vmax.f32 %v1446_v57, %v1462_v61  ;;  %v1479_v47 = vmax.f32 %v1447_v43, %v1463_v44 }
 0x178   : > { %1494 = vst [vmem:[%s2345_s4 + $0x70] sm:$0xff] %v1478_v46  ;;  %1495 = vst [vmem:[%s2345_s4 + $0x78] sm:$0xff] %v1479_v47 }
 0x179 PF: > { %s14_s17 = sadd.s32 1, %s1950_s17   ;;  %s2346_s15 = smov %s1946_s16 }
 0x17a   : > { %p11_p8 = scmp.ge.s32.totalorder %s14_s17, 6   ;;  %s2347_s16 = smov %s2349_s18 }
 0x17c   :  { %13 = sbr.rel (!%p11_p8) target bundleno = 2 (0x2), region = 87 }

</bundles_post_ra>
